<compile_context>
chip_gen: v7x
topology: tpu7x:2x2x1
jax: 0.10.0
libtpu: 0.0.40
codegen_flags: <defaults>
</compile_context>

<pallas_src>
import jax
import jax.numpy as jnp
from jax import lax
from jax.experimental import pallas as pl
from jax.experimental.pallas import tpu as pltpu


_PAD_CZ = 8      # latent channels padded to one f32 sublane group
_PAD_COUT = 16   # decoder output channels padded to one bf16 sublane tile


def _round_up(x, m):
    return ((x + m - 1) // m) * m


def _plan_m(m, max_tm=512):
    """Pick (Mp, tm): lane tiles are multiples of 128 and as large as possible,
    but keep >= 2 grid steps when M allows so v7x's two TensorCores share work.
    With K <= 64 and bf16 operands, tm=512 double-buffered is << 1 MiB of VMEM,
    comfortably inside even v7x's 64 MiB budget."""
    mp = _round_up(m, 128)
    if mp <= 128:
        return mp, 128
    tm = max(128, min(max_tm, (mp // 2) // 128 * 128))
    mp = _round_up(mp, tm)
    return mp, tm


# ----------------------------------------------------------------------------
# Pallas kernels
# ----------------------------------------------------------------------------
def _enc_fused_kernel(w_ref, p_ref, b_ref, eps_ref, z_ref):
    """Encoder conv GEMM + bias + reparameterization, lane-dense layout.

    w_ref   : (2*Czp, Kp) bf16  rows [0:Czp) = mean weights, [Czp:) = logvar
    p_ref   : (Kp, tm)    bf16  im2col patches^T (K on sublanes, M on lanes)
    b_ref   : (2*Czp, 1)  f32   packed bias
    eps_ref : (Czp, tm)   f32   standard-normal noise
    z_ref   : (Czp, tm)   f32   z = mean + exp(0.5 * logvar) * eps
    """
    half = w_ref.shape[0] // 2
    acc = jnp.dot(w_ref[...], p_ref[...], preferred_element_type=jnp.float32)
    acc = acc + b_ref[...]                     # f32 epilogue
    mean = acc[:half, :]
    logvar = acc[half:, :]
    z_ref[...] = mean + jnp.exp(0.5 * logvar) * eps_ref[...]


def _matmul_bias_kernel(w_ref, p_ref, b_ref, o_ref):
    """Decoder conv GEMM: (Cout_pad, Kp) @ (Kp, tm) + bias, lane-dense output."""
    acc = jnp.dot(w_ref[...], p_ref[...], preferred_element_type=jnp.float32)
    o_ref[...] = (acc + b_ref[...]).astype(o_ref.dtype)


# ----------------------------------------------------------------------------
# Pallas-backed ops
# ----------------------------------------------------------------------------
def _encoder_fused_pallas(wt_packed, p_t, b_packed, eps, tm):
    crows, kp = wt_packed.shape           # (16, Kp)
    czp = crows // 2
    _, mp = p_t.shape
    cost = pl.CostEstimate(
        flops=int(2 * crows * kp * mp),
        transcendentals=int(czp * mp),
        bytes_accessed=int(wt_packed.size * 2 + p_t.size * 2
                           + b_packed.size * 4 + eps.size * 4 + czp * mp * 4),
    )
    return pl.pallas_call(
        _enc_fused_kernel,
        out_shape=jax.ShapeDtypeStruct((czp, mp), jnp.float32),
        grid=(mp // tm,),
        in_specs=[
            pl.BlockSpec((crows, kp), lambda i: (0, 0)),
            pl.BlockSpec((kp, tm), lambda i: (0, i)),
            pl.BlockSpec((crows, 1), lambda i: (0, 0)),
            pl.BlockSpec((czp, tm), lambda i: (0, i)),
        ],
        out_specs=pl.BlockSpec((czp, tm), lambda i: (0, i)),
        compiler_params=pltpu.CompilerParams(
            dimension_semantics=("parallel",),
            vmem_limit_bytes=32 * 1024 * 1024,
        ),
        cost_estimate=cost,
    )(wt_packed, p_t, b_packed, eps)


def _matmul_bias_t_pallas(wt_packed, p_t, b_packed, tm):
    cp, kp = wt_packed.shape
    _, mp = p_t.shape
    cost = pl.CostEstimate(
        flops=int(2 * cp * kp * mp),
        transcendentals=0,
        bytes_accessed=int(wt_packed.size * 2 + p_t.size * 2
                           + b_packed.size * 4 + cp * mp * 4),
    )
    return pl.pallas_call(
        _matmul_bias_kernel,
        out_shape=jax.ShapeDtypeStruct((cp, mp), jnp.float32),
        grid=(mp // tm,),
        in_specs=[
            pl.BlockSpec((cp, kp), lambda i: (0, 0)),
            pl.BlockSpec((kp, tm), lambda i: (0, i)),
            pl.BlockSpec((cp, 1), lambda i: (0, 0)),
        ],
        out_specs=pl.BlockSpec((cp, tm), lambda i: (0, i)),
        compiler_params=pltpu.CompilerParams(
            dimension_semantics=("parallel",),
            vmem_limit_bytes=32 * 1024 * 1024,
        ),
        cost_estimate=cost,
    )(wt_packed, p_t, b_packed)


# ----------------------------------------------------------------------------
# Patch matrices (XLA glue; static slicing / gathers only)
# ----------------------------------------------------------------------------
def _im2col_t(x_nhwc, kh, kw, stride, padding, k_pad):
    """Transposed im2col: (kh*kw*Cin padded to k_pad, N*Ho*Wo)."""
    n, h, w, cin = x_nhwc.shape
    xp = jnp.pad(x_nhwc, ((0, 0), (padding, padding), (padding, padding), (0, 0)))
    ho = (h + 2 * padding - kh) // stride + 1
    wo = (w + 2 * padding - kw) // stride + 1
    cols = []
    for dh in range(kh):
        for dw in range(kw):
            cols.append(
                xp[:, dh:dh + stride * ho:stride, dw:dw + stride * wo:stride, :])
    pt = jnp.stack(cols, axis=0)                       # (kh*kw, N, Ho, Wo, Cin)
    pt = jnp.moveaxis(pt, -1, 1).reshape(kh * kw * cin, n * ho * wo)
    k = kh * kw * cin
    if k_pad > k:
        pt = jnp.pad(pt, ((0, k_pad - k), (0, 0)))
    return pt, (n, ho, wo)


def _im2col_t_nearest2x(z_nhwc, kh, kw, padding, k_pad):
    """Patches^T for a conv kxk / stride 1 applied to a nearest-2x upsample of z,
    gathered directly from the low-res latents (the 4x upsampled tensor is
    never materialized in HBM)."""
    n, h, w, cin = z_nhwc.shape
    ho, wo = 2 * h, 2 * w
    oh = jnp.arange(ho)
    ow = jnp.arange(wo)
    cols = []
    for dh in range(kh):
        ih = oh + dh - padding                  # index in (virtual) upsampled space
        mh = (ih >= 0) & (ih < ho)
        sh = jnp.clip(ih, 0, ho - 1) // 2       # source row in low-res z
        for dw in range(kw):
            iw = ow + dw - padding
            mw = (iw >= 0) & (iw < wo)
            sw = jnp.clip(iw, 0, wo - 1) // 2
            col = z_nhwc[:, sh][:, :, sw]       # (N, Ho, Wo, Cin)
            mask = (mh[:, None] & mw[None, :]).astype(col.dtype)
            cols.append(col * mask[None, :, :, None])
    pt = jnp.stack(cols, axis=0)
    pt = jnp.moveaxis(pt, -1, 1).reshape(kh * kw * cin, n * ho * wo)
    k = kh * kw * cin
    if k_pad > k:
        pt = jnp.pad(pt, ((0, k_pad - k), (0, 0)))
    return pt, (n, ho, wo)


# ----------------------------------------------------------------------------
# Synthetic VAE + HeatMap module
# ----------------------------------------------------------------------------
class TinyVAE:
    """Deterministic tiny VAE: conv3x3/s2 encoder -> 2*Cz moments,
    nearest-x2 upsample + conv3x3/s1 decoder.  Weights are pre-packed into the
    transposed / padded / bf16 layout the Pallas GEMMs consume."""

    def __init__(self, key, c_in=3, c_latent=4):
        assert c_latent <= _PAD_CZ and c_in <= _PAD_COUT
        self.c_in = c_in
        self.c_latent = c_latent
        k_enc, k_dec = jax.random.split(key)

        # Raw HWIO weights (kept in f32 for the pure-JAX reference).
        self.w_enc = (jax.random.normal(k_enc, (3, 3, c_in, 2 * c_latent),
                                        jnp.float32) / jnp.sqrt(9.0 * c_in))
        self.b_enc = jnp.zeros((2 * c_latent,), jnp.float32)
        self.w_dec = (jax.random.normal(k_dec, (3, 3, c_latent, c_in),
                                        jnp.float32) / jnp.sqrt(9.0 * c_latent))
        self.b_dec = jnp.zeros((c_in,), jnp.float32)

        # --- packed encoder params: rows [0:Cz)=mean, [PAD_CZ:PAD_CZ+Cz)=logvar
        k_enc_dim = 9 * c_in
        self.k_enc_pad = _round_up(k_enc_dim, 32)
        wt = self.w_enc.reshape(k_enc_dim, 2 * c_latent).T          # (2Cz, K)
        wt_pad = jnp.zeros((2 * _PAD_CZ, self.k_enc_pad), jnp.float32)
        wt_pad = wt_pad.at[0:c_latent, :k_enc_dim].set(wt[:c_latent])
        wt_pad = wt_pad.at[_PAD_CZ:_PAD_CZ + c_latent, :k_enc_dim].set(wt[c_latent:])
        self.wt_enc_packed = wt_pad.astype(jnp.bfloat16)
        b_pad = jnp.zeros((2 * _PAD_CZ, 1), jnp.float32)
        b_pad = b_pad.at[0:c_latent, 0].set(self.b_enc[:c_latent])
        b_pad = b_pad.at[_PAD_CZ:_PAD_CZ + c_latent, 0].set(self.b_enc[c_latent:])
        self.b_enc_packed = b_pad

        # --- packed decoder params (Cout padded to a bf16 sublane tile)
        k_dec_dim = 9 * c_latent
        self.k_dec_pad = _round_up(k_dec_dim, 32)
        self.cout_dec_pad = _PAD_COUT
        wtd = self.w_dec.reshape(k_dec_dim, c_in).T                 # (Cin, K)
        wtd_pad = jnp.zeros((self.cout_dec_pad, self.k_dec_pad), jnp.float32)
        wtd_pad = wtd_pad.at[:c_in, :k_dec_dim].set(wtd)
        self.wt_dec_packed = wtd_pad.astype(jnp.bfloat16)
        bd = jnp.zeros((self.cout_dec_pad, 1), jnp.float32)
        self.b_dec_packed = bd.at[:c_in, 0].set(self.b_dec)

    def encode_sample(self, x_nhwc, eps_key):
        """Fused conv3x3/s2 + bias + latent_dist.sample() in one pallas_call."""
        p_t, (n, ho, wo) = _im2col_t(x_nhwc, 3, 3, stride=2, padding=1,
                                     k_pad=self.k_enc_pad)
        m = n * ho * wo
        mp, tm = _plan_m(m)
        p_t = jnp.pad(p_t, ((0, 0), (0, mp - m)))
        cz = self.c_latent
        eps = jax.random.normal(eps_key, (cz, m), jnp.float32)
        eps = jnp.pad(eps, ((0, _PAD_CZ - cz), (0, mp - m)))
        z = _encoder_fused_pallas(self.wt_enc_packed, p_t.astype(jnp.bfloat16),
                                  self.b_enc_packed, eps, tm)
        z = z[:cz, :m]                                   # (Cz, M)
        return z.T.reshape(n, ho, wo, cz)

    def decode(self, z_nhwc):
        """Nearest-x2 upsample (folded into the patch gather) + conv3x3/s1."""
        p_t, (n, ho, wo) = _im2col_t_nearest2x(z_nhwc, kh=3, kw=3, padding=1,
                                               k_pad=self.k_dec_pad)
        m = n * ho * wo
        mp, tm = _plan_m(m)
        p_t = jnp.pad(p_t, ((0, 0), (0, mp - m)))
        out = _matmul_bias_t_pallas(self.wt_dec_packed, p_t.astype(jnp.bfloat16),
                                    self.b_dec_packed, tm)
        out = out[:self.c_in, :m]                        # (Cin, M)
        return out.T.reshape(n, ho, wo, self.c_in)


class HeatMapPallas:
    """Mirrors HeatMap.forward: encode -> sample -> decode, returns
    (reconstructed image, clip_distance=None)."""

    def __init__(self, vae_model):
        self.vae_model = vae_model
        # TODO(synk): the reference module also holds CLIP / LPIPS / captioning
        # models and a text prompt, but its forward never uses them for the
        # returned values, so they are intentionally omitted here.

    def forward(self, square_images_nchw, kernel_radius=None, device=None,
                i=None, *, eps_key):
        _ = square_images_nchw.shape[-2:]  # cropped_size (unused downstream)
        x_nhwc = jnp.transpose(square_images_nchw, (0, 2, 3, 1)).astype(jnp.float32)
        latents = self.vae_model.encode_sample(x_nhwc, eps_key)
        image_nhwc = self.vae_model.decode(latents)
        image_nchw = jnp.transpose(image_nhwc, (0, 3, 1, 2))
        clip_distance = None  # matches reference: never computed
        # .detach().cpu() has no JAX equivalent / is a no-op here.
        return image_nchw, clip_distance


# ----------------------------------------------------------------------------
# Pure-JAX reference (same bf16-rounded operands) for layout/ordering checks
# ----------------------------------------------------------------------------
def _reference_forward(vae, imgs_nchw, eps_key):
    x = jnp.transpose(imgs_nchw, (0, 2, 3, 1)).astype(jnp.float32)
    xb = x.astype(jnp.bfloat16).astype(jnp.float32)
    we = vae.w_enc.astype(jnp.bfloat16).astype(jnp.float32)
    moments = lax.conv_general_dilated(
        xb, we, window_strides=(2, 2), padding=((1, 1), (1, 1)),
        dimension_numbers=("NHWC", "HWIO", "NHWC"),
        precision=lax.Precision.HIGHEST) + vae.b_enc
    n, ho, wo, _ = moments.shape
    cz = vae.c_latent
    mean, logvar = moments[..., :cz], moments[..., cz:]
    eps = jax.random.normal(eps_key, (cz, n * ho * wo), jnp.float32)
    eps = eps.T.reshape(n, ho, wo, cz)
    z = mean + jnp.exp(0.5 * logvar) * eps
    up = jnp.repeat(jnp.repeat(z, 2, axis=1), 2, axis=2)
    ub = up.astype(jnp.bfloat16).astype(jnp.float32)
    wd = vae.w_dec.astype(jnp.bfloat16).astype(jnp.float32)
    img = lax.conv_general_dilated(
        ub, wd, window_strides=(1, 1), padding=((1, 1), (1, 1)),
        dimension_numbers=("NHWC", "HWIO", "NHWC"),
        precision=lax.Precision.HIGHEST) + vae.b_dec
    return jnp.transpose(img, (0, 3, 1, 2))


# ----------------------------------------------------------------------------
# main
# ----------------------------------------------------------------------------
if __name__ == "__main__":
    key = jax.random.PRNGKey(0)
    k_img, k_vae, k_eps = jax.random.split(key, 3)

    N, C, H, W = 2, 3, 16, 16
    square_images = jax.random.normal(k_img, (N, C, H, W), jnp.float32)

    vae = TinyVAE(k_vae, c_in=C, c_latent=4)
    heatmap = HeatMapPallas(vae)

    fwd = jax.jit(lambda imgs, ek: heatmap.forward(
        imgs, kernel_radius=3, device=None, i=0, eps_key=ek))
    image_tensor, clip_distance = fwd(square_images, k_eps)
    image_tensor = jax.block_until_ready(image_tensor)

    assert image_tensor.shape == (N, C, H, W), image_tensor.shape
    assert clip_distance is None
    assert bool(jnp.all(jnp.isfinite(image_tensor)))

    # Correctness vs. pure-JAX reference using the same bf16-rounded operands
    # (differences limited to accumulation order / exp implementation).
    ref = jax.jit(lambda imgs, ek: _reference_forward(vae, imgs, ek))(
        square_images, k_eps)
    ref = jax.block_until_ready(ref)
    max_err = float(jnp.max(jnp.abs(image_tensor - ref)))
    assert bool(jnp.allclose(image_tensor, ref, rtol=5e-2, atol=5e-2)), max_err

    # TODO(synk): fully in-kernel patch extraction (overlapping H/W BlockSpecs
    # forming the 3x3 window in VMEM) would also remove the 9x im2col traffic;
    # left as a follow-up.
    print("KERNEL_OK")
</pallas_src>

<mosaic_0001>
module attributes {stable_mosaic.version = 11 : i64} {
  func.func @_enc_fused_kernel(%arg0: i32, %arg1: memref<16x32xbf16, #tpu.memory_space<vmem>>, %arg2: memref<32x128xbf16, #tpu.memory_space<vmem>>, %arg3: memref<16x1xf32, #tpu.memory_space<vmem>>, %arg4: memref<8x128xf32, #tpu.memory_space<vmem>>, %arg5: memref<8x128xf32, #tpu.memory_space<vmem>>) attributes {dimension_semantics = [#tpu.dimension_semantics<parallel>], iteration_bounds = array<i64: 1>, scalar_prefetch = 0 : i64, scratch_operands = 0 : i64, tpu.core_type = #tpu.core_type<tc>, window_params = [{pipeline_mode = #tpu.pipeline_mode<synchronous>, transform_indices = @transform_0, window_bounds = array<i64: 16, 32>}, {transform_indices = @transform_1, window_bounds = array<i64: 32, 128>}, {pipeline_mode = #tpu.pipeline_mode<synchronous>, transform_indices = @transform_2, window_bounds = array<i64: 16, 1>}, {transform_indices = @transform_3, window_bounds = array<i64: 8, 128>}, {transform_indices = @transform_4, window_bounds = array<i64: 8, 128>}]} {
    %c0 = arith.constant 0 : index
    %c0_0 = arith.constant 0 : index
    %0 = vector.load %arg1[%c0, %c0_0] : memref<16x32xbf16, #tpu.memory_space<vmem>>, vector<16x32xbf16>
    %c0_1 = arith.constant 0 : index
    %c0_2 = arith.constant 0 : index
    %1 = vector.load %arg2[%c0_1, %c0_2] : memref<32x128xbf16, #tpu.memory_space<vmem>>, vector<32x128xbf16>
    %cst = arith.constant dense<0.000000e+00> : vector<16x128xf32>
    %2 = tpu.matmul %0, %1, %cst {dimension_numbers = #tpu.dot_dimension_numbers<[1], [0], [0], [1], [0, 0, 1, 1], [], []>} : vector<16x32xbf16>, vector<32x128xbf16>, vector<16x128xf32> -> vector<16x128xf32>
    %c0_3 = arith.constant 0 : index
    %c0_4 = arith.constant 0 : index
    %3 = vector.load %arg3[%c0_3, %c0_4] : memref<16x1xf32, #tpu.memory_space<vmem>>, vector<16x1xf32>
    %4 = vector.broadcast %3 : vector<16x1xf32> to vector<16x128xf32>
    %5 = arith.addf %2, %4 : vector<16x128xf32>
    %6 = vector.extract_strided_slice %5 {offsets = [0, 0], sizes = [8, 128], strides = [1, 1]} : vector<16x128xf32> to vector<8x128xf32>
    %7 = vector.extract_strided_slice %5 {offsets = [8, 0], sizes = [8, 128], strides = [1, 1]} : vector<16x128xf32> to vector<8x128xf32>
    %cst_5 = arith.constant 5.000000e-01 : f32
    %8 = vector.broadcast %cst_5 : f32 to vector<8x128xf32>
    %9 = arith.mulf %8, %7 : vector<8x128xf32>
    %10 = math.exp %9 : vector<8x128xf32>
    %c0_6 = arith.constant 0 : index
    %c0_7 = arith.constant 0 : index
    %11 = vector.load %arg4[%c0_6, %c0_7] : memref<8x128xf32, #tpu.memory_space<vmem>>, vector<8x128xf32>
    %12 = arith.mulf %10, %11 : vector<8x128xf32>
    %13 = arith.addf %6, %12 : vector<8x128xf32>
    %c0_8 = arith.constant 0 : index
    %c0_9 = arith.constant 0 : index
    %14 = vector.load %arg5[%c0_8, %c0_9] : memref<8x128xf32, #tpu.memory_space<vmem>>, vector<8x128xf32>
    tpu.vector_store %arg5[%c0_8, %c0_9], %13 {strides = array<i32>} : memref<8x128xf32, #tpu.memory_space<vmem>>, vector<8x128xf32>,
    return
  }
  func.func @transform_0(%arg0: i32) -> (i32, i32) {
    %c0_i32 = arith.constant 0 : i32
    %c0_i32_0 = arith.constant 0 : i32
    %c0_i32_1 = arith.constant 0 : i32
    return %c0_i32, %c0_i32_0 : i32, i32
  }
  func.func @transform_1(%arg0: i32) -> (i32, i32) {
    %c0_i32 = arith.constant 0 : i32
    %c0_i32_0 = arith.constant 0 : i32
    return %c0_i32, %arg0 : i32, i32
  }
  func.func @transform_2(%arg0: i32) -> (i32, i32) {
    %c0_i32 = arith.constant 0 : i32
    %c0_i32_0 = arith.constant 0 : i32
    %c0_i32_1 = arith.constant 0 : i32
    return %c0_i32, %c0_i32_0 : i32, i32
  }
  func.func @transform_3(%arg0: i32) -> (i32, i32) {
    %c0_i32 = arith.constant 0 : i32
    %c0_i32_0 = arith.constant 0 : i32
    return %c0_i32, %arg0 : i32, i32
  }
  func.func @transform_4(%arg0: i32) -> (i32, i32) {
    %c0_i32 = arith.constant 0 : i32
    %c0_i32_0 = arith.constant 0 : i32
    return %c0_i32, %arg0 : i32, i32
  }
}

module attributes {stable_mosaic.version = 11 : i64} {
  func.func @_matmul_bias_kernel(%arg0: i32, %arg1: memref<16x64xbf16, #tpu.memory_space<vmem>>, %arg2: memref<64x256xbf16, #tpu.memory_space<vmem>>, %arg3: memref<16x1xf32, #tpu.memory_space<vmem>>, %arg4: memref<16x256xf32, #tpu.memory_space<vmem>>) attributes {dimension_semantics = [#tpu.dimension_semantics<parallel>], iteration_bounds = array<i64: 2>, scalar_prefetch = 0 : i64, scratch_operands = 0 : i64, tpu.core_type = #tpu.core_type<tc>, window_params = [{pipeline_mode = #tpu.pipeline_mode<synchronous>, transform_indices = @transform_0, window_bounds = array<i64: 16, 64>}, {transform_indices = @transform_1, window_bounds = array<i64: 64, 256>}, {pipeline_mode = #tpu.pipeline_mode<synchronous>, transform_indices = @transform_2, window_bounds = array<i64: 16, 1>}, {transform_indices = @transform_3, window_bounds = array<i64: 16, 256>}]} {
    %c0 = arith.constant 0 : index
    %c0_0 = arith.constant 0 : index
    %0 = vector.load %arg1[%c0, %c0_0] : memref<16x64xbf16, #tpu.memory_space<vmem>>, vector<16x64xbf16>
    %c0_1 = arith.constant 0 : index
    %c0_2 = arith.constant 0 : index
    %1 = vector.load %arg2[%c0_1, %c0_2] : memref<64x256xbf16, #tpu.memory_space<vmem>>, vector<64x256xbf16>
    %cst = arith.constant dense<0.000000e+00> : vector<16x256xf32>
    %2 = tpu.matmul %0, %1, %cst {dimension_numbers = #tpu.dot_dimension_numbers<[1], [0], [0], [1], [0, 0, 1, 1], [], []>} : vector<16x64xbf16>, vector<64x256xbf16>, vector<16x256xf32> -> vector<16x256xf32>
    %c0_3 = arith.constant 0 : index
    %c0_4 = arith.constant 0 : index
    %3 = vector.load %arg3[%c0_3, %c0_4] : memref<16x1xf32, #tpu.memory_space<vmem>>, vector<16x1xf32>
    %4 = vector.broadcast %3 : vector<16x1xf32> to vector<16x256xf32>
    %5 = arith.addf %2, %4 : vector<16x256xf32>
    %c0_5 = arith.constant 0 : index
    %c0_6 = arith.constant 0 : index
    %6 = vector.load %arg4[%c0_5, %c0_6] : memref<16x256xf32, #tpu.memory_space<vmem>>, vector<16x256xf32>
    tpu.vector_store %arg4[%c0_5, %c0_6], %5 {strides = array<i32>} : memref<16x256xf32, #tpu.memory_space<vmem>>, vector<16x256xf32>,
    return
  }
  func.func @transform_0(%arg0: i32) -> (i32, i32) {
    %c0_i32 = arith.constant 0 : i32
    %c0_i32_0 = arith.constant 0 : i32
    %c0_i32_1 = arith.constant 0 : i32
    return %c0_i32, %c0_i32_0 : i32, i32
  }
  func.func @transform_1(%arg0: i32) -> (i32, i32) {
    %c0_i32 = arith.constant 0 : i32
    %c0_i32_0 = arith.constant 0 : i32
    return %c0_i32, %arg0 : i32, i32
  }
  func.func @transform_2(%arg0: i32) -> (i32, i32) {
    %c0_i32 = arith.constant 0 : i32
    %c0_i32_0 = arith.constant 0 : i32
    %c0_i32_1 = arith.constant 0 : i32
    return %c0_i32, %c0_i32_0 : i32, i32
  }
  func.func @transform_3(%arg0: i32) -> (i32, i32) {
    %c0_i32 = arith.constant 0 : i32
    %c0_i32_0 = arith.constant 0 : i32
    return %c0_i32, %arg0 : i32, i32
  }
}

</mosaic_0001>

<bundles_post_ra>
// kernel: _lambda_.2
= control target key start
LH: loop header
LB: loop body
LE: loop exit
PB: predicated region body
PF: predicated region fallthrough
CT: control target
= control target key end

     0   :  { %v133_v0 = vmov 0.0   ;;  %vm134_vm0 = vmmov 0   ;;  %v135_v2 = vmov 0   ;;  %vm53_vm1 = vcmask 261120   ;;  %s182_s1 = inlined_call_operand.vmem [shape: bf16[32,128], index: 1, kind: input, shape index: {}]   ;;  %s183_s2 = inlined_call_operand.vmem [shape: f32[16,1], index: 2, kind: input, shape index: {}]   ;;  %s184_s0 = inlined_call_operand.vmem [shape: bf16[16,32], index: 0, kind: input, shape index: {}]   ;;  %s185_s3 = inlined_call_operand.vmem [shape: f32[8,128], index: 3, kind: input, shape index: {}]   ;;  %s186_s4 = inlined_call_operand.vmem [shape: f32[8,128], index: 4, kind: output, shape index: {}]  }
   0x1   :  { %116 = vmatprep.subr.bf16.mxu0 %v133_v0  ;;  %v128_v1 = vld [vmem:[%s182_s1] sm:$0xff]   ;;  %120 = vmatprep.mubr.msk.bf16.mxu0 %vm134_vm0, %v133_v0  ;;  %v129_v3 = vld [vmem:[%s182_s1 + $0x8] sm:$0xff]  }
   0x2   :  { %127 = vset.pattern.permute.xlu0 %v135_v2  ;;  %117 = vmatpush3.bf16.msra.mxu0 %v128_v1  ;;  %v25_v4 = vld [vmem:[%s183_s2 + $0x8] sm:$0xff]  ;;  %v130_v5 = vld [vmem:[%s184_s0] sm:$0xff]  }
   0x3   :  { %118 = vmatprep.subr.bf16.mxu0 %v133_v0  ;;  %33 = vperm.xlu0 %127, %v25_v4   ;;  %v24_v6 = vld [vmem:[%s183_s2] sm:$0xff] }
   0x4   :  { %v101_v16 = vld [vmem:[%s185_s3] sm:$0xff] }
   0x6   :  { %119 = vmatpush3.bf16.msra.mxu0 %v129_v3 }
   0x7   :  { %28 = vperm.xlu0 %127, %v24_v6  }
   0x9   :  { %121 = vmatmul.mubr.msk.bf16.vlgmr.msra.gmra.mrb[0].mxu0 %vm53_vm1, %v130_v5 }
  0x82   :  { %v34_v9 = vpop.permute.xlu0 %33 }
  0x86   :  { %v29_v15 = vpop.permute.xlu0 %28 }
  0xdc   :  { %v91_v7 = vpop.f32.mrb[0].mxu0 }
  0xdd   :  { %v122_v8 = vpop.f32.mrb[1].mxu0  ;;  %v92_v18 = vadd.f32 %v91_v7, %v29_v15 }
  0xde   :  { %v94_v10 = vpop.f32.mrb[2].mxu0 }
  0xdf   :  { %v95_v11 = vadd.f32 %v94_v10, %v34_v9  ;;  %v123_v12 = vpop.f32.mrb[3].mxu0 }
  0xe1   :  { %v98_v13 = vmul.f32 0.5, %v95_v11 }
  0xe3   :  { %v99_v14 = vmul.f32 1.442695, %v98_v13 }
  0xe5   :  { %131 = vpow2.f32 %v99_v14 }
  0xef   :  { %v132_v17 = vpop.eup %131 }
  0xf0   :  { %v102_v19 = vmul.f32 %v132_v17, %v101_v16 }
  0xf2   :  { %v103_v20 = vadd.f32 %v102_v19, %v92_v18 }
  0xf4   :  { %104 = vst [vmem:[%s186_s4] sm:$0xff] %v103_v20 }

// kernel: _lambda_.3
= control target key start
LH: loop header
LB: loop body
LE: loop exit
PB: predicated region body
PF: predicated region fallthrough
CT: control target
= control target key end

     0   :  { %s549_s12 = smov 0   ;;  %s551_s13 = smov 0   ;;  %s618_s0 = inlined_call_operand.vmem [shape: bf16[16,64], index: 0, kind: input, shape index: {}]   ;;  %s619_s1 = inlined_call_operand.vmem [shape: bf16[64,512], index: 1, kind: input, shape index: {}]   ;;  %s620_s2 = inlined_call_operand.vmem [shape: f32[16,1], index: 2, kind: input, shape index: {}]   ;;  %s621_s3 = inlined_call_operand.vmem [shape: f32[16,512], index: 3, kind: output, shape index: {}]  }
   0x1   :  { %s553_s14 = smov 0  }
   0x2 LB: > { %s438_s15 = sadd.s32 4294967295, %s526_s14   ;;  %s566_s16 = sadd.s32 1, %s526_s14   ;;  %s526_s14 = sphi %s553_s14, %s625_s14   ;;  %s522_s13 = sphi %s551_s13, %s624_s13   ;;  %s518_s12 = sphi %s549_s12, %s623_s12  }
   0x3   : > { %s38_s17 = ssub.s32 %s526_s14, %s566_s16  ;;  %s41_s18 = sadd.s32 1, %s522_s13 }
   0x4   : > { %p39_p0 = scmp.eq.s32.totalorder %s38_s17, 0  ;;  %p48_p1 = scmp.ne.s32.totalorder %s522_s13, %s518_s12 }
   0x5   : > { %p49_p2 = scmp.eq.s32.totalorder %s526_s14, 0  ;;  %p99_p3 = scmp.eq.s32.totalorder %s438_s15, 1 }
   0x6   : > { %s577_s19 = scalar_select %p39_p0, %s522_s13, %s41_s18  }
   0x7   : > { %p50_p4 = por %p49_p2, %p48_p1  ;;  %p579_p5 = por %p99_p3, %p48_p1 }
   0x8   : > { %p441_p6 = scmp.ge.s32.totalorder %s526_s14, 2 }
   0xa   : > { %127 = sbr.rel (%p441_p6) target bundleno = 25 (0x19), region = 24 }
  0x11   : > { %130 = sbr.rel (!%p50_p4) target bundleno = 25 (0x19), region = 28  ;;  %s132_s21 = sand.u32 (%p50_p4), 1, %s522_s13  }
  0x12   : > { %s463_s22 = sshll.u32 (%p50_p4), %s526_s14, 3  ;;  %s442_s23 = sshll.u32 (%p50_p4), %s132_s21, 6 }
  0x13   : > { %s137_s26 = scalar_lea.vmem (%p50_p4), %s619_s1, %s463_s22  ;;  %s134_s27 = scalar_lea.vmem (%p50_p4), [#allocation2], %s442_s23 }
  0x14   : > { %v179_v0 = vld [vmem:[%s137_s26] sm:$0xff] (%p50_p4)  ;;  %v181_v1 = vld [vmem:[%s137_s26 + $0x10] sm:$0xff] (%p50_p4) }
  0x15   : > { %v183_v2 = vld [vmem:[%s137_s26 + $0x20] sm:$0xff] (%p50_p4)  ;;  %180 = vst [vmem:[%s134_s27] sm:$0xff] (%p50_p4), %v179_v0  ;;  %182 = vst [vmem:[%s134_s27 + $0x8] sm:$0xff] (%p50_p4), %v181_v1  ;;  %v185_v3 = vld [vmem:[%s137_s26 + $0x30] sm:$0xff] (%p50_p4) }
  0x16   : > { %184 = vst [vmem:[%s134_s27 + $0x10] sm:$0xff] (%p50_p4), %v183_v2  ;;  %v187_v4 = vld [vmem:[%s137_s26 + $0x40] sm:$0xff] (%p50_p4)  ;;  %v189_v5 = vld [vmem:[%s137_s26 + $0x50] sm:$0xff] (%p50_p4)  ;;  %186 = vst [vmem:[%s134_s27 + $0x18] sm:$0xff] (%p50_p4), %v185_v3 }
  0x17   : > { %188 = vst [vmem:[%s134_s27 + $0x20] sm:$0xff] (%p50_p4), %v187_v4  ;;  %190 = vst [vmem:[%s134_s27 + $0x28] sm:$0xff] (%p50_p4), %v189_v5  ;;  %v191_v6 = vld [vmem:[%s137_s26 + $0x60] sm:$0xff] (%p50_p4)  ;;  %v193_v7 = vld [vmem:[%s137_s26 + $0x70] sm:$0xff] (%p50_p4) }
  0x18   : > { %192 = vst [vmem:[%s134_s27 + $0x30] sm:$0xff] %v191_v6  ;;  %194 = vst [vmem:[%s134_s27 + $0x38] sm:$0xff] %v193_v7 }
  0x19 PF: > { %p445_p7 = scmp.ge.s32.totalorder %s526_s14, 1  ;;  %p199_p8 = scmp.lt.s32.totalorder %s526_s14, 3 }
  0x1b   : > { %p200_p9 = pnand %p445_p7, %p199_p8 }
  0x1c   : > { %s206_s28 = sand.u32 (!%p200_p9), 1, %s518_s12   ;;  %v528_v8 = vmov (!%p200_p9), 0   ;;  %v241_v9 = vld [vmem:[%s620_s2] sm:$0xff] (!%p200_p9)  ;;  %v242_v10 = vld [vmem:[%s620_s2 + $0x8] sm:$0xff] (!%p200_p9)  ;;  %vm298_vm0 = vcmask (!%p200_p9), 523264  }
  0x1d   : > { %203 = sbr.rel (%p200_p9) target bundleno = 274 (0x112), region = 66  ;;  %s446_s29 = sshll.u32 (!%p200_p9), %s206_s28, 6  ;;  %334 = vmatprep.mubr.bf16.mxu0 (!%p200_p9), %v528_v8  ;;  %490 = vset.pattern.permute.xlu0 (!%p200_p9), %v528_v8  ;;  %v503_v19 = vld [vmem:[%s618_s0] sm:$0xff] (!%p200_p9)  }
  0x1e   : > { %245 = vperm.xlu0 (!%p200_p9), %490, %v241_v9   ;;  %s208_s7 = scalar_lea.vmem (!%p200_p9), [#allocation2], %s446_s29  ;;  %s447_s10 = sshll.u32 (!%p200_p9), %s206_s28, 5 }
  0x1f   : > { %v491_v11 = vld [vmem:[%s208_s7 + $0x4] ss:$8 sps:$4 sm:$0xff] (!%p200_p9)   ;;  %v493_v12 = vld [vmem:[%s208_s7] ss:$8 sps:$4 sm:$0xff] (!%p200_p9)   ;;  %v494_v13 = vld [vmem:[%s208_s7 + $0x14] ss:$8 sps:$4 sm:$0xff] (!%p200_p9)  }
  0x20   : > { %302 = vmatprep.subr.bf16.mxu0 (!%p200_p9), %v491_v11  ;;  %v496_v14 = vld [vmem:[%s208_s7 + $0x10] ss:$8 sps:$4 sm:$0xff] (!%p200_p9)   ;;  %v497_v15 = vld [vmem:[%s208_s7 + $0x24] ss:$8 sps:$4 sm:$0xff] (!%p200_p9)   ;;  %v499_v16 = vld [vmem:[%s208_s7 + $0x20] ss:$8 sps:$4 sm:$0xff] (!%p200_p9)  }
  0x21   : > { %303 = vmatpush1.bf16.msra.mxu0 (!%p200_p9), %v493_v12  ;;  %v500_v17 = vld [vmem:[%s208_s7 + $0x34] ss:$8 sps:$4 sm:$0xff] (!%p200_p9)   ;;  %v502_v18 = vld [vmem:[%s208_s7 + $0x30] ss:$8 sps:$4 sm:$0xff] (!%p200_p9)   ;;  %s227_s11 = scalar_lea.vmem (!%p200_p9), [#allocation3], %s447_s10 }
  0x22   : > { %250 = vperm.xlu0 (!%p200_p9), %490, %v242_v10   ;;  %304 = vmatprep.subr.bf16.mxu0 (!%p200_p9), %v494_v13 }
  0x24   : > { %s464_s12 = sshll.u32 (%p579_p5), %s438_s15, 4 }
  0x25   : > { %305 = vmatpush1.bf16.msra.mxu0 %v496_v14  ;;  %s358_s21 = scalar_lea.vmem (%p579_p5), %s621_s3, %s464_s12 }
  0x26   : > { %306 = vmatprep.subr.bf16.mxu0 %v497_v15 }
  0x29   : > { %307 = vmatpush1.bf16.msra.mxu0 %v499_v16 }
  0x2a   : > { %308 = vmatprep.subr.bf16.mxu0 %v500_v17 }
  0x2d   : > { %309 = vmatpush1.bf16.msra.mxu0 %v502_v18 }
  0x30   : > { %457 = vmatmul.mubr.msk.bf16.vlgmr.msra.gmra.mrb[0].mxu0 %vm298_vm0, %v503_v19 }
  0x9d   : > { %v246_v20 = vpop.permute.xlu0 %245 }
  0xa1   : > { %v251_v24 = vpop.permute.xlu0 %250 }
 0x103   : > { %v336_v21 = vpop.f32.mrb[0].mxu0  ;;  %355 = sbr.rel (!%p579_p5) target bundleno = 274 (0x112), region = 74 }
 0x104   : > { %v337_v22 = vadd.f32 %v336_v21, %v246_v20  ;;  %v338_v23 = vpop.f32.mrb[1].mxu0 }
 0x105   : > { %v339_v25 = vadd.f32 %v338_v23, %v246_v20  ;;  %v340_v26 = vpop.f32.mrb[2].mxu0 }
 0x106   : > { %345 = vst [vmem:[%s227_s11] sm:$0xff] %v337_v22  ;;  %v341_v27 = vadd.f32 %v340_v26, %v251_v24  ;;  %v342_v28 = vpop.f32.mrb[3].mxu0 }
 0x107   : > { %346 = vst [vmem:[%s227_s11 + $0x8] sm:$0xff] %v339_v25  ;;  %v343_v29 = vadd.f32 %v342_v28, %v251_v24 }
 0x108   : > { %347 = vst [vmem:[%s227_s11 + $0x10] sm:$0xff] %v341_v27 }
 0x109   : > { %348 = vst [vmem:[%s227_s11 + $0x18] sm:$0xff] %v343_v29 }
 0x10d   : > { %v371_v30 = vld [vmem:[%s227_s11] sm:$0xff] }
 0x10e   : > { %v373_v31 = vld [vmem:[%s227_s11 + $0x8] sm:$0xff]  ;;  %372 = vst [vmem:[%s358_s21] sm:$0xff] %v371_v30 }
 0x10f   : > { %v375_v32 = vld [vmem:[%s227_s11 + $0x10] sm:$0xff]  ;;  %374 = vst [vmem:[%s358_s21 + $0x8] sm:$0xff] %v373_v31 }
 0x110   : > { %v377_v33 = vld [vmem:[%s227_s11 + $0x18] sm:$0xff]  ;;  %376 = vst [vmem:[%s358_s21 + $0x20] sm:$0xff] %v375_v32 }
 0x111   : > { %378 = vst [vmem:[%s358_s21 + $0x28] sm:$0xff] %v377_v33 }
 0x112 PF: > { %p10_p10 = scmp.ge.s32.totalorder %s566_s16, 4   ;;  %s623_s12 = smov %s522_s13 }
 0x113   : > { %s624_s13 = smov %s577_s19  ;;  %s625_s14 = smov %s566_s16 }
 0x114   :  { %12 = sbr.rel (!%p10_p10) target bundleno = 2 (0x2), region = 128 }

</bundles_post_ra>
